<compile_context>
chip_gen: v7x
topology: tpu7x:2x2x1
jax: 0.10.0
libtpu: 0.0.40
codegen_flags: <defaults>
</compile_context>

<pallas_src>
import jax
import jax.numpy as jnp
from jax.experimental import pallas as pl
from jax.experimental.pallas import tpu as pltpu

IN_FEATURES = 20
HIDDEN = 25

# Batch rows per tile on the tiled (large-B) path.
BLOCK_ROWS = 32768
# Tiny batches use a single full-array block (block dims == array dims is
# always legal, no alignment rules).
SINGLE_BLOCK_MAX = 512


def _round_up(x, m):
    return ((x + m - 1) // m) * m


def mlp_kernel(x_ref, w1_ref, b1_ref, w2_ref, b2_ref, out_ref):
    x = x_ref[...]                        # (TM, 20) f32
    w1 = w1_ref[...]                      # (20, 25) VMEM-resident (constant index_map)
    b1 = b1_ref[...]                      # (1, 25)
    w2 = w2_ref[...]                      # (1, 25)

    # fc1 + ReLU: MXU matmul with f32 accumulation; HIGHEST precision keeps
    # f32 parity with PyTorch and is hidden under the HBM stream here.
    h = jnp.dot(x, w1,
                preferred_element_type=jnp.float32,
                precision=jax.lax.Precision.HIGHEST) + b1          # (TM, 25)
    h = jnp.maximum(h, 0.0)

    # fc2 (25 -> 1) as VPU multiply + XLU lane reduction (an N=1 MXU matmul
    # would use <1% of the MXU and serialise through its result FIFO).
    out_row = jnp.sum(h * w2, axis=-1)                              # (TM,)

    # Lane-dense store: output block is (1, TM) so TM sits on the lane axis
    # (unmasked vst instead of width-1 masked partial stores).
    out_ref[...] = (out_row[None, :] + b2_ref[...]).astype(out_ref.dtype)


def _choose_tile(B, block_rows):
    if B <= SINGLE_BLOCK_MAX:
        return B                          # one full-array block
    # Tiled path: multiple of 128 so the (1, tm) output block is lane-aligned,
    # and at least 2 grid steps so both v7x TensorCores get work.
    return min(block_rows, _round_up(pl.cdiv(B, 2), 128))


def net_forward(x, w1, b1, w2, b2, *, block_rows=BLOCK_ROWS):
    B, F = x.shape
    assert F == IN_FEATURES

    tm = _choose_tile(B, block_rows)
    grid = (pl.cdiv(B, tm),)

    # VMEM budget with layout padding: (tm, 20) f32 lane-pads to 128 -> tm*512 B
    # per buffer; (1, tm) output sublane-pads to 8 -> tm*32 B per buffer; both
    # double-buffered by the BlockSpec pipeline.  Params are tiny.
    x_buf_bytes = 2 * tm * 128 * 4
    out_buf_bytes = 2 * 8 * _round_up(tm, 128) * 4
    param_bytes = 256 * 1024
    vmem_needed = x_buf_bytes + out_buf_bytes + param_bytes
    # 25% headroom, never below the 32 MiB default, capped well under v7x's
    # 64 MiB physical VMEM.
    vmem_limit = min(max(vmem_needed * 5 // 4, 32 << 20), 48 << 20)

    flops = 2 * B * (IN_FEATURES * HIDDEN + HIDDEN)
    bytes_accessed = (x.size * x.dtype.itemsize + B * 4
                      + (w1.size + b1.size + w2.size + b2.size) * 4)

    const2d = lambda i: (0, 0)
    out = pl.pallas_call(
        mlp_kernel,
        out_shape=jax.ShapeDtypeStruct((1, B), jnp.float32),
        grid=grid,
        in_specs=[
            # x: tiled over batch rows (double-buffered HBM->VMEM DMA).
            pl.BlockSpec((tm, IN_FEATURES), lambda i: (i, 0)),
            # Params: constant block index -> DMA'd once, kept VMEM-resident.
            pl.BlockSpec(w1.shape, const2d),
            pl.BlockSpec(b1.shape, const2d),
            pl.BlockSpec(w2.shape, const2d),
            pl.BlockSpec(b2.shape, const2d),
        ],
        # Lane-dense output slab; reshaped to (B, 1) in the wrapper.
        out_specs=pl.BlockSpec((1, tm), lambda i: (0, i)),
        compiler_params=pltpu.CompilerParams(
            dimension_semantics=("parallel",),
            vmem_limit_bytes=int(vmem_limit)),
        cost_estimate=pl.CostEstimate(
            flops=int(flops),
            transcendentals=0,
            bytes_accessed=int(bytes_accessed)),
    )(x, w1, b1, w2, b2)
    return out.reshape(B, 1)


def init_params(key):
    """PyTorch nn.Linear default init: uniform(-1/sqrt(fan_in), 1/sqrt(fan_in)).
    w1 stored transposed ((in, out)); b1/w2/b2 kept 2-D for clean TPU layout."""
    k1, k2, k3, k4 = jax.random.split(key, 4)
    bound1 = 1.0 / jnp.sqrt(IN_FEATURES)
    bound2 = 1.0 / jnp.sqrt(HIDDEN)
    w1 = jax.random.uniform(k1, (IN_FEATURES, HIDDEN), jnp.float32, -bound1, bound1)
    b1 = jax.random.uniform(k2, (1, HIDDEN), jnp.float32, -bound1, bound1)
    w2 = jax.random.uniform(k3, (1, HIDDEN), jnp.float32, -bound2, bound2)
    b2 = jax.random.uniform(k4, (1, 1), jnp.float32, -bound2, bound2)
    return w1, b1, w2, b2


if __name__ == "__main__":
    key = jax.random.PRNGKey(0)
    k_x1, k_x2, k_x3, k_p = jax.random.split(key, 4)
    w1, b1, w2, b2 = init_params(k_p)

    def reference(xv):
        h = jnp.maximum(xv @ w1 + b1, 0.0)
        return h @ w2.T + b2

    # Small batch: single full-array block path.
    B1 = 8
    x1 = jax.random.normal(k_x1, (B1, IN_FEATURES), jnp.float32)
    o1 = net_forward(x1, w1, b1, w2, b2)
    jax.block_until_ready(o1)
    assert o1.shape == (B1, 1)
    assert jnp.allclose(o1, reference(x1), atol=1e-4, rtol=1e-4)

    # Larger batch: pipelined 2-step grid (megacore-shardable on v7x).
    B2 = 4096
    x2 = jax.random.normal(k_x2, (B2, IN_FEATURES), jnp.float32)
    o2 = net_forward(x2, w1, b1, w2, b2)
    jax.block_until_ready(o2)
    assert o2.shape == (B2, 1)
    assert jnp.allclose(o2, reference(x2), atol=1e-4, rtol=1e-4)

    # Ragged batch: last grid step computes on Pallas-padded rows; the padded
    # output lanes are masked on writeback, so results stay correct.
    B3 = 3000
    x3 = jax.random.normal(k_x3, (B3, IN_FEATURES), jnp.float32)
    o3 = net_forward(x3, w1, b1, w2, b2)
    jax.block_until_ready(o3)
    assert o3.shape == (B3, 1)
    assert jnp.allclose(o3, reference(x3), atol=1e-4, rtol=1e-4)

    print("KERNEL_OK")
</pallas_src>

<mosaic_0001>
module attributes {stable_mosaic.version = 11 : i64} {
  func.func @mlp_kernel(%arg0: i32, %arg1: memref<8x20xf32, #tpu.memory_space<vmem>>, %arg2: memref<20x25xf32, #tpu.memory_space<vmem>>, %arg3: memref<1x25xf32, #tpu.memory_space<vmem>>, %arg4: memref<1x25xf32, #tpu.memory_space<vmem>>, %arg5: memref<1x1xf32, #tpu.memory_space<vmem>>, %arg6: memref<1x8xf32, #tpu.memory_space<vmem>>) attributes {dimension_semantics = [#tpu.dimension_semantics<parallel>], iteration_bounds = array<i64: 1>, scalar_prefetch = 0 : i64, scratch_operands = 0 : i64, tpu.core_type = #tpu.core_type<tc>, window_params = [{transform_indices = @transform_0, window_bounds = array<i64: 8, 20>}, {pipeline_mode = #tpu.pipeline_mode<synchronous>, transform_indices = @transform_1, window_bounds = array<i64: 20, 25>}, {pipeline_mode = #tpu.pipeline_mode<synchronous>, transform_indices = @transform_2, window_bounds = array<i64: 1, 25>}, {pipeline_mode = #tpu.pipeline_mode<synchronous>, transform_indices = @transform_3, window_bounds = array<i64: 1, 25>}, {pipeline_mode = #tpu.pipeline_mode<synchronous>, transform_indices = @transform_4, window_bounds = array<i64: 1, 1>}, {transform_indices = @transform_5, window_bounds = array<i64: 1, 8>}]} {
    %c0 = arith.constant 0 : index
    %c0_0 = arith.constant 0 : index
    %0 = vector.load %arg1[%c0, %c0_0] : memref<8x20xf32, #tpu.memory_space<vmem>>, vector<8x20xf32>
    %c0_1 = arith.constant 0 : index
    %c0_2 = arith.constant 0 : index
    %1 = vector.load %arg2[%c0_1, %c0_2] : memref<20x25xf32, #tpu.memory_space<vmem>>, vector<20x25xf32>
    %c0_3 = arith.constant 0 : index
    %c0_4 = arith.constant 0 : index
    %2 = vector.load %arg3[%c0_3, %c0_4] : memref<1x25xf32, #tpu.memory_space<vmem>>, vector<1x25xf32>
    %c0_5 = arith.constant 0 : index
    %c0_6 = arith.constant 0 : index
    %3 = vector.load %arg4[%c0_5, %c0_6] : memref<1x25xf32, #tpu.memory_space<vmem>>, vector<1x25xf32>
    %cst = arith.constant dense<0.000000e+00> : vector<8x25xf32>
    %4 = tpu.matmul %0, %1, %cst {dimension_numbers = #tpu.dot_dimension_numbers<[1], [0], [0], [1], [0, 0, 1, 1], [], []>, precision = #tpu.contract_precision<fp32>} : vector<8x20xf32>, vector<20x25xf32>, vector<8x25xf32> -> vector<8x25xf32>
    %5 = vector.broadcast %2 : vector<1x25xf32> to vector<8x25xf32>
    %6 = arith.addf %4, %5 : vector<8x25xf32>
    %cst_7 = arith.constant 0.000000e+00 : f32
    %7 = vector.broadcast %cst_7 : f32 to vector<8x25xf32>
    %8 = arith.maximumf %6, %7 : vector<8x25xf32>
    %9 = vector.broadcast %3 : vector<1x25xf32> to vector<8x25xf32>
    %10 = arith.mulf %8, %9 : vector<8x25xf32>
    %cst_8 = arith.constant dense<0.000000e+00> : vector<8xf32>
    %11 = vector.multi_reduction <add>, %10, %cst_8 [1] : vector<8x25xf32> to vector<8xf32>
    %12 = vector.shape_cast %11 : vector<8xf32> to vector<1x8xf32>
    %c0_9 = arith.constant 0 : index
    %c0_10 = arith.constant 0 : index
    %13 = vector.load %arg5[%c0_9, %c0_10] : memref<1x1xf32, #tpu.memory_space<vmem>>, vector<1x1xf32>
    %14 = vector.broadcast %13 : vector<1x1xf32> to vector<1x8xf32>
    %15 = arith.addf %12, %14 : vector<1x8xf32>
    %c0_11 = arith.constant 0 : index
    %c0_12 = arith.constant 0 : index
    %16 = vector.load %arg6[%c0_11, %c0_12] : memref<1x8xf32, #tpu.memory_space<vmem>>, vector<1x8xf32>
    tpu.vector_store %arg6[%c0_11, %c0_12], %15 {strides = array<i32>} : memref<1x8xf32, #tpu.memory_space<vmem>>, vector<1x8xf32>,
    return
  }
  func.func @transform_0(%arg0: i32) -> (i32, i32) {
    %c0_i32 = arith.constant 0 : i32
    %c0_i32_0 = arith.constant 0 : i32
    return %arg0, %c0_i32 : i32, i32
  }
  func.func @transform_1(%arg0: i32) -> (i32, i32) {
    %c0_i32 = arith.constant 0 : i32
    %c0_i32_0 = arith.constant 0 : i32
    %c0_i32_1 = arith.constant 0 : i32
    return %c0_i32, %c0_i32_0 : i32, i32
  }
  func.func @transform_2(%arg0: i32) -> (i32, i32) {
    %c0_i32 = arith.constant 0 : i32
    %c0_i32_0 = arith.constant 0 : i32
    %c0_i32_1 = arith.constant 0 : i32
    return %c0_i32, %c0_i32_0 : i32, i32
  }
  func.func @transform_3(%arg0: i32) -> (i32, i32) {
    %c0_i32 = arith.constant 0 : i32
    %c0_i32_0 = arith.constant 0 : i32
    %c0_i32_1 = arith.constant 0 : i32
    return %c0_i32, %c0_i32_0 : i32, i32
  }
  func.func @transform_4(%arg0: i32) -> (i32, i32) {
    %c0_i32 = arith.constant 0 : i32
    %c0_i32_0 = arith.constant 0 : i32
    %c0_i32_1 = arith.constant 0 : i32
    return %c0_i32, %c0_i32_0 : i32, i32
  }
  func.func @transform_5(%arg0: i32) -> (i32, i32) {
    %c0_i32 = arith.constant 0 : i32
    %c0_i32_0 = arith.constant 0 : i32
    return %c0_i32, %arg0 : i32, i32
  }
}

</mosaic_0001>

<bundles_post_ra>
// kernel: tpu_custom_call.1
= control target key start
LH: loop header
LB: loop body
LE: loop exit
PB: predicated region body
PF: predicated region fallthrough
CT: control target
= control target key end

     0   :  { %s877_s0 = inlined_call_operand.hbm [shape: f32[8,20], index: 0, kind: input, shape index: {}]   ;;  %s878_s1 = inlined_call_operand.hbm [shape: f32[20,25], index: 1, kind: input, shape index: {}]   ;;  %s879_s2 = inlined_call_operand.vmem [shape: f32[1,25], index: 2, kind: input, shape index: {}]   ;;  %s880_s3 = inlined_call_operand.vmem [shape: f32[1,25], index: 3, kind: input, shape index: {}]   ;;  %s881_s4 = inlined_call_operand.<no memory space> [shape: f32[1,1], index: 4, kind: input, shape index: {}]   ;;  %s882_s5 = inlined_call_operand.hbm [shape: f32[1,8], index: 5, kind: output, shape index: {}]  }
   0x1   :  { %v10_v0 = vstv %s881_s4 }
   0x2   :  { %11 = vst [vmem:[#allocation2] sm:$0x1] %v10_v0 }
   0x3   :  { %12 = vsyncpa [#allocation4], 0 }
   0x4   :  { %13 = vsyncpa [#allocation7], 0 }
   0x5   :  { %14 = vsyncpa [#allocation5], 0  ;;  %s780_s20 = smov [#allocation3]   ;;  %s781_s22 = smov [#allocation6]  }
   0x6   :  { %s21_s21 = sshll.u32 %s780_s20, 4  ;;  %s30_s23 = sshll.u32 %s781_s22, 4  ;;  %s22_s21 = int_to_ptr.vmem [resolvable:$true] %s21_s21  ;;  %s822_s23 = int_to_ptr.vmem [resolvable:$true] %s30_s23 }
   0x7   :  { %s708_s26 = scalar_lea.hbm %s877_s0, 128 }
   0x8   :  { %p709_p0 = scmp.ne.s32.totalorder %s877_s0, %s708_s26  ;;  %p712_p1 = scmp.lt.u32.totalorder %s708_s26, %s877_s0 }
   0xa   :  { %p714_p2 = pnand %p712_p1, %p709_p0 }
   0xc   :  { %717 = shalt.err (!%p714_p2)
}
   0xd   :  { %s718_s30 = scalar_lea.vmem %s22_s21, 128  ;;  %p723_p4 = scmp.lt.s32.totalorder %s22_s21, %s22_s21 }
   0xe   :  { %p719_p3 = scmp.ne.s32.totalorder %s22_s21, %s718_s30  ;;  %p724_p5 = scmp.lt.s32.totalorder %s718_s30, %s718_s30 }
  0x10   :  { %p725_p6 = por %p724_p5, %p723_p4 }
  0x12   :  { %p726_p7 = pnand %p725_p6, %p719_p3 }
  0x14   :  { %729 = shalt.err (!%p726_p7)
}
  0x15   :  { %24 = dma.hbm_to_vmem [thread:$0]  %s877_s0, 128, %s22_s21, [#allocation4]  }
  0x16   :  { %s730_s10 = scalar_lea.hbm %s878_s1, 384 }
  0x17   :  { %p731_p8 = scmp.ne.s32.totalorder %s878_s1, %s730_s10  ;;  %p734_p9 = scmp.lt.u32.totalorder %s730_s10, %s878_s1 }
  0x19   :  { %p736_p10 = pnand %p734_p9, %p731_p8 }
  0x1b   :  { %739 = shalt.err (!%p736_p10)
}
  0x1c   :  { %s740_s15 = scalar_lea.vmem %s822_s23, 384  ;;  %p745_p12 = scmp.lt.s32.totalorder %s822_s23, %s822_s23 }
  0x1d   :  { %p741_p11 = scmp.ne.s32.totalorder %s822_s23, %s740_s15  ;;  %p746_p13 = scmp.lt.s32.totalorder %s740_s15, %s740_s15 }
  0x1f   :  { %p747_p0 = por %p746_p13, %p745_p12 }
  0x21   :  { %p748_p1 = pnand %p747_p0, %p741_p11 }
  0x23   :  { %751 = shalt.err (!%p748_p1)
}
  0x24   :  { %s782_s0 = smov 128   ;;  %s783_s16 = smov 8  }
  0x25   :  { %36 = dma.hbm_to_vmem [thread:$0]  %s878_s1, 384, %s822_s23, [#allocation7], %s782_s0, %s782_s0, %s783_s16  }
  0x26   :  { %774 = dma.done.wait [#allocation4], 128  }
  0x27   :  { %775 = vsyncadd [#allocation4], 4294967168 }
  0x28   :  { %776 = dma.done.wait [#allocation7], 384  }
  0x29   :  { %777 = vsyncadd [#allocation7], 4294966912  ;;  %v784_v1 = vmov 0.0|0.0   ;;  %vm785_vm0 = vmmov 0   ;;  %v786_v2 = vmov 0.0   ;;  %vm65_vm1 = vcmask 1043456  }
  0x2a   :  { %679 = vmatprep.subr.bf16.mxu0 %v784_v1  ;;  %670 = vmatprep.subr.bf16.mxu1 %v784_v1  ;;  %vm61_vm2 = vcmask 162816   ;;  %v50_v3 = vld [vmem:[#allocation6] sm:$0xff]  ;;  %v51_v4 = vld [vmem:[#allocation6 + $0x8] sm:$0xff]  ;;  %v52_v5 = vld [vmem:[#allocation6 + $0x10] sm:$0xf]  ;;  %v787_v33 = vmov 0   ;;  %v559_v46 = vlaneseq }
  0x2b   :  { %649 = vmatprep.mubr.msk.f32.mxu0 %vm785_vm0, %v786_v2  ;;  %622 = vmatprep.mubr.msk.f32.mxu1 %vm785_vm0, %v786_v2  ;;  %v70_v6 = vand.u32 4294901760, %v50_v3  ;;  %v73_v7 = vand.u32 4294901760, %v51_v4  ;;  %v67_v8 = vsel %vm65_vm1, %v52_v5, 0  ;;  %v49_v9 = vld [vmem:[#allocation3] sm:$0xff]  ;;  %v590_v36 = vld [vmem:[%s879_s2] ss:$0 sm:$0xff] }
  0x2c   :  { %v76_v10 = vand.u32 4294901760, %v67_v8  ;;  %v63_v11 = vsel %vm61_vm2, %v49_v9, 0  ;;  %707 = vset.pattern.permute.xlu0 %v787_v33  ;;  %v591_v41 = vld [vmem:[%s880_s3] ss:$0 sm:$0xff]  ;;  %vm549_vm3 = vcmask 203776   ;;  %v560_v47 = vshrl.u32 %v559_v46, 7 }
  0x2d   :  { %v671_v12 = vpack.c.bf16 %v73_v7, %v70_v6  ;;  %v149_v13 = vsub.f32 %v50_v3, %v70_v6  ;;  %v156_v14 = vsub.f32 %v51_v4, %v73_v7  ;;  %v137_v15 = vand.u32 4294901760, %v63_v11  ;;  %v553_v45 = vld [vmem:[#allocation2] sm:$0x1]  ;;  %s788_s2 = smov [#allocation8]  }
  0x2e   :  { %v163_v16 = vsub.f32 %v67_v8, %v76_v10  ;;  %v561_v49 = vsub.s32 0, %v560_v47  ;;  %v566_v50 = vand.u32 127, %v559_v46  ;;  %s580_s22 = sshll.u32 %s788_s2, 4  ;;  %vm572_vm4 = vcmask 57344   ;;  %s581_s22 = int_to_ptr.vmem [resolvable:$true] %s580_s22 }
  0x2f   :  { %681 = vmatpush3.bf16.msra.mxu0 %v671_v12  ;;  %672 = vmatpush3.bf16.msra.mxu1 %v671_v12  ;;  %v138_v17 = vsub.f32 %v63_v11, %v137_v15  ;;  %v150_v18 = vand.u32 4294901760, %v149_v13  ;;  %v157_v19 = vand.u32 4294901760, %v156_v14  ;;  %v677_v32 = vpack.c.bf16 %v156_v14, %v149_v13  ;;  %s752_s3 = scalar_lea.vmem %s581_s22, 16  ;;  %s756_s23 = scalar_lea.vmem %s581_s22, 32 }
  0x30   :  { %647 = vmatprep.subr.mxu0 %v786_v2  ;;  %620 = vmatprep.subr.mxu1 %v786_v2  ;;  %v164_v20 = vand.u32 4294901760, %v163_v16  ;;  %v569_v52 = vsub.s32 %v566_v50, %v560_v47  ;;  %p753_p2 = scmp.ne.s32.totalorder %s581_s22, %s752_s3  ;;  %p757_p3 = scmp.lt.s32.totalorder %s581_s22, %s581_s22 }
  0x31   :  { %v139_v21 = vand.u32 4294901760, %v138_v17  ;;  %v151_v22 = vsub.f32 %v149_v13, %v150_v18  ;;  %v158_v23 = vsub.f32 %v156_v14, %v157_v19  ;;  %v683_v24 = vpack.c.bf16 %v157_v19, %v150_v18  ;;  %p758_p4 = scmp.lt.s32.totalorder %s756_s23, %s752_s3 }
  0x32   :  { %v165_v28 = vsub.f32 %v163_v16, %v164_v20 }
  0x33   :  { %648 = vmatpush3.msra.mxu0 %v76_v10  ;;  %621 = vmatpush3.msra.mxu1 %v76_v10  ;;  %v140_v25 = vsub.f32 %v138_v17, %v139_v21  ;;  %v152_v26 = vand.u32 4294901760, %v151_v22  ;;  %v159_v27 = vand.u32 4294901760, %v158_v23  ;;  %p759_p5 = por %p758_p4, %p757_p3 }
  0x34   :  { %650 = vmatmul.mubr.f32.vlgmr.msra.gmra.mrb[0].mxu0 %v139_v21  ;;  %673 = vmatprep.subr.bf16.mxu1 %v784_v1  ;;  %v166_v31 = vand.u32 4294901760, %v165_v28 }
  0x35   :  { %v141_v29 = vand.u32 4294901760, %v140_v25  ;;  %682 = vmatprep.subr.bf16.mxu0 %v784_v1  ;;  %v674_v30 = vpack.c.bf16 %v159_v27, %v152_v26  ;;  %658 = vmatprep.mubr.msk.f32.mxu0 %vm785_vm0, %v786_v2  ;;  %p760_p6 = pnand %p759_p5, %p753_p2 }
  0x36   :  { %684 = vmatpush3.bf16.msra.mxu0 %v683_v24 }
  0x37   :  { %623 = vmatmul.mubr.f32.vlgmr.msra.gmra.mrb[0].mxu1 %v141_v29  ;;  %656 = vmatprep.subr.mxu0 %v786_v2 }
  0x38   :  { %675 = vmatpush3.bf16.msra.mxu1 %v674_v30  ;;  %631 = vmatprep.mubr.msk.f32.mxu1 %vm785_vm0, %v786_v2 }
  0x39   :  { %629 = vmatprep.subr.mxu1 %v786_v2 }
  0x3a   :  { %657 = vmatpush3.msra.mxu0 %v164_v20 }
  0x3b   :  { %685 = vmatprep.subr.bf16.mxu0 %v784_v1 }
  0x3c   :  { %630 = vmatpush3.msra.mxu1 %v166_v31  ;;  %659 = vmatmul.mubr.f32.vlgmr.msra.gmra.mrb[0].mxu0 %v137_v15 }
  0x3d   :  { %676 = vmatprep.subr.bf16.mxu1 %v784_v1  ;;  %687 = vmatpush3.bf16.msra.mxu0 %v671_v12 }
  0x3e   :  { %665 = vmatprep.subr.mxu0 %v786_v2  ;;  %667 = vmatprep.mubr.msk.f32.mxu0 %vm785_vm0, %v786_v2 }
  0x3f   :  { %632 = vmatmul.mubr.f32.vlgmr.msra.gmra.mrb[0].mxu1 %v137_v15 }
  0x40   :  { %678 = vmatpush3.bf16.msra.mxu1 %v677_v32  ;;  %640 = vmatprep.mubr.msk.f32.mxu1 %vm785_vm0, %v786_v2 }
  0x41   :  { %638 = vmatprep.subr.mxu1 %v786_v2  ;;  %666 = vmatpush3.msra.mxu0 %v76_v10 }
  0x44   :  { %639 = vmatpush3.msra.mxu1 %v163_v16  ;;  %668 = vmatmul.mubr.f32.vlgmr.msra.gmra.mrb[0].mxu0 %v137_v15 }
  0x47   :  { %641 = vmatmul.mubr.f32.vlgmr.msra.gmra.mrb[0].mxu1 %v138_v17 }
 0x117   :  { %v537_v34 = vpop.f32.mrb[0].mxu0 }
 0x118   :  { %v669_v35 = vpop.f32.mrb[1].mxu0 }
 0x11a   :  { %v307_v37 = vpop.f32.mrb[0].mxu1 }
 0x11b   :  { %v688_v38 = vadd.f32 %v590_v36, %v307_v37  ;;  %v642_v39 = vpop.f32.mrb[1].mxu1 }
 0x11d   :  { %v689_v40 = vadd.f32 %v688_v38, %v537_v34 }
 0x11f   :  { %v541_v42 = vmax.f32 %v689_v40, 0.0 }
 0x121   :  { %v548_v43 = vmul.f32 %v591_v41, %v541_v42 }
 0x123   :  { %v550_v44 = vsel %vm549_vm3, %v548_v43, 0.0 }
 0x124   :  { %551 = vadd.xlane.f32.xlu0 %v550_v44 }
 0x13a   :  { %556 = vperm.xlu0 %707, %v553_v45  }
 0x1b1   :  { %v552_v48 = vpop.xlane.xlu0 %551 }
 0x1b9   :  { %v557_v51 = vpop.permute.xlu0 %556 }
 0x1ba   :  { %v562_v53 = vrot.slane %v557_v51, %v561_v49 }
 0x1bc   :  { %v563_v54 = vadd.f32 %v562_v53, %v552_v48 }
 0x1be   :  { %v570_v55 = vrot.slane %v563_v54, %v569_v52 }
 0x1c0   :  { %573 = vst.msk [vmem:[#allocation8] sm:$0x1] %vm572_vm4, %v570_v55 }
 0x1c1   :  { %763 = shalt.err (!%p760_p6)
}
 0x1c2   :  { %s764_s26 = scalar_lea.hbm %s882_s5, 16 }
 0x1c3   :  { %p765_p7 = scmp.ne.s32.totalorder %s882_s5, %s764_s26  ;;  %p768_p8 = scmp.lt.u32.totalorder %s764_s26, %s882_s5 }
 0x1c5   :  { %p770_p9 = pnand %p768_p8, %p765_p7 }
 0x1c7   :  { %773 = shalt.err (!%p770_p9)
}
 0x1c8   :  { %583 = dma.vmem_to_hbm [thread:$0]  %s581_s22, 16, %s882_s5, [#allocation5]  }
 0x1c9   :  { %778 = dma.done.wait [#allocation5], 16  }
 0x1ca   :  { %779 = vsyncadd [#allocation5], 4294967280 }
 0x1cb   :  { %587 = vsyncpa [#allocation4], 1 }
 0x1cc   :  { %588 = vsyncpa [#allocation7], 1 }
 0x1cd   :  { %589 = vsyncpa [#allocation5], 1 }

</bundles_post_ra>
